<compile_context>
chip_gen: v5e
topology: v5e:2x2
jax: 0.10.0
libtpu: 0.0.40
codegen_flags: <defaults>
</compile_context>

<pallas_src>
import numpy as np
import jax
import jax.numpy as jnp
from jax.experimental import pallas as pl
from jax.experimental.pallas import tpu as pltpu

EPS = 1e-12  # F.normalize default eps


def convap_kernel(x_ref, pt_ref, w_ref, b_ref, o_ref):
    """One grid step processes `nb` images with two batched MXU matmuls.

    x_ref:  (nb*Cin, S)    input block (S = H*W on the lane axis, native dtype)
    pt_ref: (S, P)         adaptive-avg-pool matrix (P = s1*s2)
    w_ref:  (Cout, Cin)    1x1 conv weight
    b_ref:  (Cout, 1)      1x1 conv bias
    o_ref:  (nb, Cout, P)  L2-normalized pooled features
    """
    nb, cout, p = o_ref.shape
    cin = w_ref.shape[1]

    # Adaptive average pooling first (it commutes with the 1x1 conv): a single
    # MXU matmul over the whole block, f32 accumulation regardless of x dtype.
    pooled = jnp.dot(x_ref[...], pt_ref[...],
                     preferred_element_type=jnp.float32)            # (nb*Cin, P)
    pooled = pooled.reshape(nb, cin, p)                              # free split (Cin % 8 == 0)

    # 1x1 conv with bias as ONE batched matmul: (nb,Cout,Cin) @ (nb,Cin,P).
    w_b = jnp.broadcast_to(w_ref[...].astype(jnp.float32), (nb, cout, cin))
    y = jnp.einsum('noc,ncp->nop', w_b, pooled,
                   preferred_element_type=jnp.float32)               # (nb, Cout, P)
    y = y + b_ref[...].astype(jnp.float32)[None, :, :]

    # Batched L2 normalization of each flattened (Cout*P) vector:
    # rsqrt(max(ss, eps^2)) == 1 / max(||y||, eps)   (matches F.normalize).
    ss = jnp.sum(y * y, axis=2, keepdims=True)                       # lane reduce
    ss = jnp.sum(ss, axis=1, keepdims=True)                          # sublane reduce -> (nb,1,1)
    inv = jax.lax.rsqrt(jnp.maximum(ss, EPS * EPS))                  # EUP rsqrt, no divide
    o_ref[...] = (y * inv).astype(o_ref.dtype)


def _adaptive_pool_matrix(H, W, s1, s2, dtype):
    """(H*W, s1*s2) matrix implementing nn.AdaptiveAvgPool2d((s1, s2))."""
    P = np.zeros((H * W, s1 * s2), dtype=np.float32)
    for i in range(s1):
        h0 = (i * H) // s1
        h1 = -((-(i + 1) * H) // s1)  # ceil
        for j in range(s2):
            w0 = (j * W) // s2
            w1 = -((-(j + 1) * W) // s2)
            area = (h1 - h0) * (w1 - w0)
            for h in range(h0, h1):
                for w in range(w0, w1):
                    P[h * W + w, i * s2 + j] = 1.0 / area
    return jnp.asarray(P, dtype=dtype)


def _round_up(n, m):
    return ((n + m - 1) // m) * m


def _tpu_vmem_and_cores():
    """Physical VMEM bytes per core + TensorCore count (generation-aware)."""
    vmem_cap = 64 << 20  # conservative fallback (v7x per-core physical VMEM)
    try:
        cap = int(getattr(pltpu.get_tpu_info(), "vmem_capacity_bytes", 0))
        if cap > 0:
            vmem_cap = cap
    except Exception:
        pass
    vmem_cap = max(32 << 20, min(vmem_cap, 256 << 20))
    # 64-MiB-per-core parts (v7x) have 2 TensorCores; 128-MiB parts (v5e/v6e) 1.
    num_tc = 2 if vmem_cap <= (64 << 20) else 1
    return vmem_cap, num_tc


def _choose_block_n(N, Cin, Cout, S, P, x_itemsize, vmem_cap, num_tc):
    """Images per grid step, via explicit VMEM math.

    Pallas double-buffers every blocked operand, and all f32 intermediates with
    a tiny logical last dim (P = s1*s2) still occupy full 128-lane vreg rows.
    """
    LANE = 128
    s_pad = _round_up(S, LANE)
    p_pad = _round_up(P, LANE)
    cin_pad = _round_up(Cin, LANE)

    x_block = Cin * s_pad * x_itemsize                 # one x buffer per image
    per_image = (
        2 * x_block                                    # double-buffered x block
        + Cin * p_pad * 4                              # pooled (f32, lane-padded)
        + Cout * cin_pad * 4                           # broadcast conv-weight slab
        + 2 * Cout * p_pad * 4                         # y + normalized y (f32)
        + 2 * Cout * p_pad * 4                         # double-buffered output block
    )
    fixed = 2 * (S * p_pad + Cout * cin_pad + Cout * LANE) * 4 + (4 << 20)

    # ~3/4 of physical VMEM, capped at 96 MiB:
    #   v5e/v6e (128 MiB) -> 96 MiB,  v7x (64 MiB) -> 48 MiB.
    vmem_limit = max(32 << 20, min((vmem_cap * 3) // 4, 96 << 20))
    budget = max(vmem_limit - fixed, per_image)

    block_n = int(max(1, min(N, budget // per_image)))
    # Only multi-TensorCore chips (v7x) need >= num_tc grid steps.
    if num_tc > 1 and N >= num_tc:
        block_n = min(block_n, N // num_tc)
    block_n = int(max(block_n, 1))
    # Legality: even division of N and a sublane-aligned (block_n*Cin, S) block.
    while block_n > 1 and (N % block_n != 0 or (block_n * Cin) % 8 != 0):
        block_n -= 1
    if (block_n * Cin) % 8 != 0 and block_n != N:
        block_n = N  # a full-array block is always legal
    # Fallback: if large images force a single-image block, deepen the x
    # pipeline to 3 buffers when the extra buffer still fits in the budget.
    triple_x = bool(block_n == 1 and N >= 4 and budget >= per_image + x_block)
    return block_n, int(vmem_limit), triple_x


def image_conv_ap(x_nchw, conv_weight, conv_bias, s1=2, s2=2, block_n=None):
    """conv_weight: (Cout, Cin, 1, 1), conv_bias: (Cout,). Returns (N, Cout*s1*s2)."""
    N, Cin, H, W = x_nchw.shape
    Cout = conv_weight.shape[0]
    S = H * W
    P = s1 * s2

    # Free row-major collapse; NO dtype-changing astype (x keeps its native
    # dtype so the dominant HBM read is not doubled / duplicated).
    x = x_nchw.reshape(N * Cin, S)
    w = conv_weight.reshape(Cout, Cin).astype(jnp.float32)
    b = conv_bias.reshape(Cout, 1).astype(jnp.float32)
    pt = _adaptive_pool_matrix(H, W, s1, s2, x.dtype)  # (S, P), matches x dtype

    x_itemsize = int(x.dtype.itemsize)
    vmem_cap, num_tc = _tpu_vmem_and_cores()
    if block_n is None:
        block_n, vmem_limit, triple_x = _choose_block_n(
            N, Cin, Cout, S, P, x_itemsize, vmem_cap, num_tc)
    else:
        vmem_limit = max(32 << 20, min((vmem_cap * 3) // 4, 96 << 20))
        triple_x = False
    grid = (N // block_n,)

    # x BlockSpec; deepen its pipeline only in the small-block fallback case.
    if triple_x:
        x_spec = pl.BlockSpec((block_n * Cin, S), lambda i: (i, 0),
                              pipeline_mode=pl.Buffered(3))
    else:
        x_spec = pl.BlockSpec((block_n * Cin, S), lambda i: (i, 0))

    cost = pl.CostEstimate(
        flops=int(2 * N * Cin * P * (S + Cout)),
        bytes_accessed=int(N * Cin * S * x_itemsize + N * Cout * P * 4
                           + S * P * int(pt.dtype.itemsize) + Cout * (Cin + 1) * 4),
        transcendentals=int(N),
    )

    out = pl.pallas_call(
        convap_kernel,
        out_shape=jax.ShapeDtypeStruct((N, Cout, P), jnp.float32),
        grid_spec=pltpu.PrefetchScalarGridSpec(
            num_scalar_prefetch=0,
            grid=grid,
            in_specs=[
                x_spec,                                          # x block
                pl.BlockSpec((S, P), lambda i: (0, 0)),          # pool matrix
                pl.BlockSpec((Cout, Cin), lambda i: (0, 0)),     # conv weight
                pl.BlockSpec((Cout, 1), lambda i: (0, 0)),       # conv bias
            ],
            out_specs=pl.BlockSpec((block_n, Cout, P), lambda i: (i, 0, 0)),
        ),
        compiler_params=pltpu.CompilerParams(
            dimension_semantics=("parallel",),
            vmem_limit_bytes=int(vmem_limit),
        ),
        cost_estimate=cost,
    )(x, pt, w, b)

    # (N, Cout, s1*s2) -> (N, Cout*s1*s2): matches x.flatten(1) ordering.
    return out.reshape(N, Cout * P)


def conv_ap_ref(x, weight, bias, s1=2, s2=2):
    """Pure-JAX reference matching the PyTorch forward (conv -> pool -> normalize)."""
    N, Cin, H, W = x.shape
    Cout = weight.shape[0]
    y = jnp.einsum("oc,nchw->nohw", weight.reshape(Cout, Cin), x) \
        + bias[None, :, None, None]
    rows = []
    for i in range(s1):
        h0, h1 = (i * H) // s1, -((-(i + 1) * H) // s1)
        cols = []
        for j in range(s2):
            w0, w1 = (j * W) // s2, -((-(j + 1) * W) // s2)
            cols.append(jnp.mean(y[:, :, h0:h1, w0:w1], axis=(2, 3)))
        rows.append(jnp.stack(cols, axis=-1))
    p = jnp.stack(rows, axis=-2)  # (N, Cout, s1, s2)
    v = p.reshape(N, -1)
    return v / jnp.maximum(jnp.linalg.norm(v, axis=1, keepdims=True), EPS)


if __name__ == "__main__":
    # Small shapes consistent with the module: batch=2, in_channels=32,
    # out_channels=64, 16x16 spatial, s1=s2=2 pooled output.
    N, Cin, H, W = 2, 32, 16, 16
    Cout, s1, s2 = 64, 2, 2

    key = jax.random.PRNGKey(0)
    kx, kw, kb = jax.random.split(key, 3)

    x = jax.random.normal(kx, (N, Cin, H, W), dtype=jnp.float32)
    bound = 1.0 / (Cin ** 0.5)  # nn.Conv2d default init bounds
    conv_weight = jax.random.uniform(
        kw, (Cout, Cin, 1, 1), dtype=jnp.float32, minval=-bound, maxval=bound
    )
    conv_bias = jax.random.uniform(
        kb, (Cout,), dtype=jnp.float32, minval=-bound, maxval=bound
    )

    out = image_conv_ap(x, conv_weight, conv_bias, s1=s1, s2=s2)
    out = jax.block_until_ready(out)

    ref = conv_ap_ref(x, conv_weight, conv_bias, s1=s1, s2=s2)
    assert out.shape == (N, Cout * s1 * s2)
    assert jnp.allclose(out, ref, atol=1e-4, rtol=1e-4), "mismatch vs reference"

    print("KERNEL_OK")
</pallas_src>

<mosaic_0001>
module attributes {stable_mosaic.version = 11 : i64} {
  func.func @convap_kernel(%arg0: i32, %arg1: memref<32x256xf32, #tpu.memory_space<vmem>>, %arg2: memref<256x4xf32, #tpu.memory_space<vmem>>, %arg3: memref<64x32xf32, #tpu.memory_space<vmem>>, %arg4: memref<64x1xf32, #tpu.memory_space<vmem>>, %arg5: memref<1x64x4xf32, #tpu.memory_space<vmem>>) attributes {dimension_semantics = [#tpu.dimension_semantics<parallel>], iteration_bounds = array<i64: 2>, scalar_prefetch = 0 : i64, scratch_operands = 0 : i64, tpu.core_type = #tpu.core_type<tc>, window_params = [{transform_indices = @transform_0, window_bounds = array<i64: 32, 256>}, {pipeline_mode = #tpu.pipeline_mode<synchronous>, transform_indices = @transform_1, window_bounds = array<i64: 256, 4>}, {pipeline_mode = #tpu.pipeline_mode<synchronous>, transform_indices = @transform_2, window_bounds = array<i64: 64, 32>}, {pipeline_mode = #tpu.pipeline_mode<synchronous>, transform_indices = @transform_3, window_bounds = array<i64: 64, 1>}, {transform_indices = @transform_4, window_bounds = array<i64: 1, 64, 4>}]} {
    %c0 = arith.constant 0 : index
    %c0_0 = arith.constant 0 : index
    %0 = vector.load %arg1[%c0, %c0_0] : memref<32x256xf32, #tpu.memory_space<vmem>>, vector<32x256xf32>
    %c0_1 = arith.constant 0 : index
    %c0_2 = arith.constant 0 : index
    %1 = vector.load %arg2[%c0_1, %c0_2] : memref<256x4xf32, #tpu.memory_space<vmem>>, vector<256x4xf32>
    %cst = arith.constant dense<0.000000e+00> : vector<32x4xf32>
    %2 = tpu.matmul %0, %1, %cst {dimension_numbers = #tpu.dot_dimension_numbers<[1], [0], [0], [1], [0, 0, 1, 1], [], []>} : vector<32x256xf32>, vector<256x4xf32>, vector<32x4xf32> -> vector<32x4xf32>
    %3 = vector.shape_cast %2 : vector<32x4xf32> to vector<1x32x4xf32>
    %c0_3 = arith.constant 0 : index
    %c0_4 = arith.constant 0 : index
    %4 = vector.load %arg3[%c0_3, %c0_4] : memref<64x32xf32, #tpu.memory_space<vmem>>, vector<64x32xf32>
    %5 = vector.shape_cast %4 : vector<64x32xf32> to vector<1x64x32xf32>
    "tpu.trace_start"() <{level = 10 : i32, message = "noc,ncp->nop"}> : () -> ()
    %cst_5 = arith.constant dense<0.000000e+00> : vector<1x64x4xf32>
    %6 = tpu.matmul %5, %3, %cst_5 {dimension_numbers = #tpu.dot_dimension_numbers<[2], [1], [1], [2], [0, 0, 0, 1, 1, 2], [0], [0]>} : vector<1x64x32xf32>, vector<1x32x4xf32>, vector<1x64x4xf32> -> vector<1x64x4xf32>
    "tpu.trace_stop"() : () -> ()
    %c0_6 = arith.constant 0 : index
    %c0_7 = arith.constant 0 : index
    %7 = vector.load %arg4[%c0_6, %c0_7] : memref<64x1xf32, #tpu.memory_space<vmem>>, vector<64x1xf32>
    %8 = vector.shape_cast %7 : vector<64x1xf32> to vector<1x64x1xf32>
    %9 = vector.broadcast %8 : vector<1x64x1xf32> to vector<1x64x4xf32>
    %10 = arith.addf %6, %9 : vector<1x64x4xf32>
    %11 = arith.mulf %10, %10 : vector<1x64x4xf32>
    %cst_8 = arith.constant dense<0.000000e+00> : vector<1x64xf32>
    %12 = vector.multi_reduction <add>, %11, %cst_8 [2] : vector<1x64x4xf32> to vector<1x64xf32>
    %13 = vector.shape_cast %12 : vector<1x64xf32> to vector<1x64x1xf32>
    %cst_9 = arith.constant dense<0.000000e+00> : vector<1x1xf32>
    %14 = vector.multi_reduction <add>, %13, %cst_9 [1] : vector<1x64x1xf32> to vector<1x1xf32>
    %15 = vector.shape_cast %14 : vector<1x1xf32> to vector<1x1x1xf32>
    %cst_10 = arith.constant 1.000000e-24 : f32
    %16 = vector.broadcast %cst_10 : f32 to vector<1x1x1xf32>
    %17 = arith.maximumf %15, %16 : vector<1x1x1xf32>
    %18 = math.rsqrt %17 : vector<1x1x1xf32>
    %19 = vector.broadcast %18 : vector<1x1x1xf32> to vector<1x64x4xf32>
    %20 = arith.mulf %10, %19 : vector<1x64x4xf32>
    %c0_11 = arith.constant 0 : index
    %c0_12 = arith.constant 0 : index
    %c0_13 = arith.constant 0 : index
    %21 = vector.load %arg5[%c0_11, %c0_12, %c0_13] : memref<1x64x4xf32, #tpu.memory_space<vmem>>, vector<1x64x4xf32>
    tpu.vector_store %arg5[%c0_11, %c0_12, %c0_13], %20 {strides = array<i32>} : memref<1x64x4xf32, #tpu.memory_space<vmem>>, vector<1x64x4xf32>,
    return
  }
  func.func @transform_0(%arg0: i32) -> (i32, i32) {
    %c0_i32 = arith.constant 0 : i32
    %c0_i32_0 = arith.constant 0 : i32
    return %arg0, %c0_i32 : i32, i32
  }
  func.func @transform_1(%arg0: i32) -> (i32, i32) {
    %c0_i32 = arith.constant 0 : i32
    %c0_i32_0 = arith.constant 0 : i32
    %c0_i32_1 = arith.constant 0 : i32
    return %c0_i32, %c0_i32_0 : i32, i32
  }
  func.func @transform_2(%arg0: i32) -> (i32, i32) {
    %c0_i32 = arith.constant 0 : i32
    %c0_i32_0 = arith.constant 0 : i32
    %c0_i32_1 = arith.constant 0 : i32
    return %c0_i32, %c0_i32_0 : i32, i32
  }
  func.func @transform_3(%arg0: i32) -> (i32, i32) {
    %c0_i32 = arith.constant 0 : i32
    %c0_i32_0 = arith.constant 0 : i32
    %c0_i32_1 = arith.constant 0 : i32
    return %c0_i32, %c0_i32_0 : i32, i32
  }
  func.func @transform_4(%arg0: i32) -> (i32, i32, i32) {
    %c0_i32 = arith.constant 0 : i32
    %c0_i32_0 = arith.constant 0 : i32
    %c0_i32_1 = arith.constant 0 : i32
    return %arg0, %c0_i32, %c0_i32_0 : i32, i32, i32
  }
}

</mosaic_0001>

<bundles_post_ra>
// kernel: tpu_custom_call.1
= control target key start
LH: loop header
LB: loop body
LE: loop exit
PB: predicated region body
PF: predicated region fallthrough
CT: control target
= control target key end

     0   :  { %s625_s15 = smov 0   ;;  %s840_s0 = inlined_call_operand.vmem [shape: f32[64,256], index: 0, kind: input, shape index: {}]   ;;  %s841_s1 = inlined_call_operand.vmem [shape: f32[256,4], index: 1, kind: input, shape index: {}]   ;;  %s842_s2 = inlined_call_operand.vmem [shape: f32[64,32], index: 2, kind: input, shape index: {}]   ;;  %s843_s3 = inlined_call_operand.vmem [shape: f32[64,1], index: 3, kind: input, shape index: {}]   ;;  %s844_s4 = inlined_call_operand.vmem [shape: f32[2,64,4], index: 4, kind: output, shape index: {}]  }
   0x1 LB: > { %s631_s16 = sadd.s32 4294967295, %s597_s15   ;;  %p555_p0 = scmp.ge.s32.totalorder %s597_s15, 1  ;;  %s597_s15 = sphi %s625_s15, %s14_s15  }
   0x2   : > { %p164_p1 = scmp.lt.s32.totalorder %s597_s15, 3 }
   0x4   : > { %p165_p2 = pnand %p555_p0, %p164_p1 }
   0x5   : > { %s556_s25 = sshll.u32 (!%p165_p2), %s631_s16, 2  ;;  %p198_p4 = scmp.lt.s32.totalorder (!%p165_p2), %s631_s16, 1 }
   0x6   : > { %168 = sbr.rel (%p165_p2) target bundleno = 544 (0x220), region = 36  ;;  %p192_p3 = scmp.lt.s32.totalorder (!%p165_p2), %s556_s25, 7 }
   0xb   : > { %v226_v0 = vld [vmem:[%s841_s1 + $0x78] sm:$0xff]  ;;  %v225_v2 = vld [vmem:[%s841_s1 + $0x70] sm:$0xff]  ;;  %v224_v4 = vld [vmem:[%s841_s1 + $0x68] sm:$0xff]  ;;  %s846_s25 = smov (!%p192_p3, %s556_s25), 7  ;;  %v599_v44 = vmov 0   ;;  %vm357_vm0 = vcmask 261120  }
   0xc   : > { %v242_v1 = vld [vmem:[%s841_s1 + $0xf8] sm:$0xff]  ;;  %243 = vmatpush.msra.mxu0 %v226_v0  ;;  %v241_v3 = vld [vmem:[%s841_s1 + $0xf0] sm:$0xff]  ;;  %v240_v5 = vld [vmem:[%s841_s1 + $0xe8] sm:$0xff]  ;;  %s571_s22 = sshll.u32 %s846_s25, 4  ;;  %586 = vset.pattern.permute.xlu0 %v599_v44  ;;  %vm431_vm1 = vcmask 31744   ;;  %s848_s16 = smov (!%p198_p4, %s631_s16), 1 }
   0xd   : > { %272 = vmatpush.msra.mxu1 %v242_v1  ;;  %v223_v6 = vld [vmem:[%s841_s1 + $0x60] sm:$0xff]  ;;  %v222_v8 = vld [vmem:[%s841_s1 + $0x58] sm:$0xff]  ;;  %v221_v10 = vld [vmem:[%s841_s1 + $0x50] sm:$0xff]  ;;  %s196_s7 = scalar_lea.vmem %s840_s0, %s571_s22  ;;  %587 = vset.pattern.permute.xlu1 %v599_v44  ;;  %s572_s22 = sshll.u32 %s848_s16, 6 }
   0xe   : > { %244 = vmatpush.msra.mxu0 %v225_v2  ;;  %v239_v7 = vld [vmem:[%s841_s1 + $0xe0] sm:$0xff]  ;;  %v238_v9 = vld [vmem:[%s841_s1 + $0xd8] sm:$0xff]  ;;  %v237_v11 = vld [vmem:[%s841_s1 + $0xd0] sm:$0xff]  ;;  %588 = vset.pattern.permute.xlu2 %v599_v44  ;;  %s202_s26 = scalar_lea.vmem %s844_s4, %s572_s22 }
   0xf   : > { %273 = vmatpush.msra.mxu1 %v241_v3  ;;  %v220_v12 = vld [vmem:[%s841_s1 + $0x48] sm:$0xff]  ;;  %v219_v14 = vld [vmem:[%s841_s1 + $0x40] sm:$0xff]  ;;  %v218_v16 = vld [vmem:[%s841_s1 + $0x38] sm:$0xff] }
  0x10   : > { %245 = vmatpush.msra.mxu0 %v224_v4  ;;  %v236_v13 = vld [vmem:[%s841_s1 + $0xc8] sm:$0xff]  ;;  %v235_v15 = vld [vmem:[%s841_s1 + $0xc0] sm:$0xff]  ;;  %v234_v17 = vld [vmem:[%s841_s1 + $0xb8] sm:$0xff] }
  0x11   : > { %274 = vmatpush.msra.mxu1 %v240_v5  ;;  %v217_v18 = vld [vmem:[%s841_s1 + $0x30] sm:$0xff]  ;;  %v216_v20 = vld [vmem:[%s841_s1 + $0x28] sm:$0xff]  ;;  %v215_v22 = vld [vmem:[%s841_s1 + $0x20] sm:$0xff] }
  0x12   : > { %246 = vmatpush.msra.mxu0 %v223_v6  ;;  %v233_v19 = vld [vmem:[%s841_s1 + $0xb0] sm:$0xff]  ;;  %v232_v21 = vld [vmem:[%s841_s1 + $0xa8] sm:$0xff]  ;;  %v231_v23 = vld [vmem:[%s841_s1 + $0xa0] sm:$0xff] }
  0x13   : > { %275 = vmatpush.msra.mxu1 %v239_v7  ;;  %v214_v24 = vld [vmem:[%s841_s1 + $0x18] sm:$0xff]  ;;  %v213_v26 = vld [vmem:[%s841_s1 + $0x10] sm:$0xff]  ;;  %v212_v28 = vld [vmem:[%s841_s1 + $0x8] sm:$0xff] }
  0x14   : > { %247 = vmatpush.msra.mxu0 %v222_v8  ;;  %v230_v25 = vld [vmem:[%s841_s1 + $0x98] sm:$0xff]  ;;  %v229_v27 = vld [vmem:[%s841_s1 + $0x90] sm:$0xff]  ;;  %v228_v29 = vld [vmem:[%s841_s1 + $0x88] sm:$0xff] }
  0x15   : > { %276 = vmatpush.msra.mxu1 %v238_v9  ;;  %v211_v30 = vld [vmem:[%s841_s1] sm:$0xff]  ;;  %v204_v33 = vld [vmem:[%s196_s7 + $0x8] sm:$0xff]  ;;  %v205_v34 = vld [vmem:[%s196_s7 + $0x10] sm:$0xff] }
  0x16   : > { %248 = vmatpush.msra.mxu0 %v221_v10  ;;  %v227_v31 = vld [vmem:[%s841_s1 + $0x80] sm:$0xff]  ;;  %v206_v35 = vld [vmem:[%s196_s7 + $0x18] sm:$0xff]  ;;  %v208_v37 = vld [vmem:[%s196_s7 + $0x28] sm:$0xff] }
  0x17   : > { %277 = vmatpush.msra.mxu1 %v237_v11  ;;  %v203_v32 = vld [vmem:[%s196_s7] sm:$0xff]  ;;  %v209_v38 = vld [vmem:[%s196_s7 + $0x30] sm:$0xff]  ;;  %v210_v39 = vld [vmem:[%s196_s7 + $0x38] sm:$0xff] }
  0x18   : > { %249 = vmatpush.msra.mxu0 %v220_v12  ;;  %v207_v36 = vld [vmem:[%s196_s7 + $0x20] sm:$0xff]  ;;  %v311_v48 = vld [vmem:[%s843_s3 + $0x10] sm:$0xff]  ;;  %v310_v52 = vld [vmem:[%s843_s3 + $0x8] sm:$0xff] }
  0x19   : > { %278 = vmatpush.msra.mxu1 %v236_v13  ;;  %v309_v47 = vld [vmem:[%s843_s3] sm:$0xff]  ;;  %329 = vperm.xlu1 %587, %v311_v48   ;;  %v312_v53 = vld [vmem:[%s843_s3 + $0x18] sm:$0xff]  ;;  %v307_v58 = vld [vmem:[%s842_s2 + $0x30] sm:$0xff] }
  0x1a   : > { %250 = vmatpush.msra.mxu0 %v219_v14  ;;  %319 = vperm.xlu0 %586, %v309_v47   ;;  %v301_v57 = vld [vmem:[%s842_s2] sm:$0xff]  ;;  %v316_v59 = vld [vmem:[%s843_s3 + $0x38] sm:$0xff]  ;;  %v315_v60 = vld [vmem:[%s843_s3 + $0x30] sm:$0xff] }
  0x1b   : > { %279 = vmatpush.msra.mxu1 %v235_v15  ;;  %v302_v61 = vld [vmem:[%s842_s2 + $0x8] sm:$0xff]  ;;  %v308_v62 = vld [vmem:[%s842_s2 + $0x38] sm:$0xff]  ;;  %v313_v63 = vld [vmem:[%s843_s3 + $0x20] sm:$0xff] }
  0x1c   : > { %251 = vmatpush.msra.mxu0 %v218_v16  ;;  %339 = vperm.xlu2 %588, %v313_v63   ;;  %v303_v0 = vld [vmem:[%s842_s2 + $0x10] sm:$0xff]  ;;  %v314_v1 = vld [vmem:[%s843_s3 + $0x28] sm:$0xff]  ;;  %v304_v2 = vld [vmem:[%s842_s2 + $0x18] sm:$0xff] }
  0x1d   : > { %280 = vmatpush.msra.mxu1 %v234_v17  ;;  %v305_v3 = vld [vmem:[%s842_s2 + $0x20] sm:$0xff]  ;;  %v306_v4 = vld [vmem:[%s842_s2 + $0x28] sm:$0xff] }
  0x1e   : > { %252 = vmatpush.msra.mxu0 %v217_v18 }
  0x1f   : > { %281 = vmatpush.msra.mxu1 %v233_v19 }
  0x20   : > { %253 = vmatpush.msra.mxu0 %v216_v20 }
  0x21   : > { %282 = vmatpush.msra.mxu1 %v232_v21  ;;  %334 = vperm.xlu1 %587, %v312_v53  }
  0x22   : > { %254 = vmatpush.msra.mxu0 %v215_v22  ;;  %324 = vperm.xlu0 %586, %v310_v52  }
  0x23   : > { %283 = vmatpush.msra.mxu1 %v231_v23 }
  0x24   : > { %255 = vmatpush.msra.mxu0 %v214_v24  ;;  %344 = vperm.xlu2 %588, %v314_v1  }
  0x25   : > { %284 = vmatpush.msra.mxu1 %v230_v25 }
  0x26   : > { %256 = vmatpush.msra.mxu0 %v213_v26 }
  0x27   : > { %285 = vmatpush.msra.mxu1 %v229_v27 }
  0x28   : > { %257 = vmatpush.msra.mxu0 %v212_v28 }
  0x29   : > { %286 = vmatpush.msra.mxu1 %v228_v29  ;;  %354 = vperm.xlu1 %587, %v316_v59  }
  0x2a   : > { %258 = vmatpush.msra.mxu0 %v211_v30  ;;  %349 = vperm.xlu0 %586, %v315_v60  }
  0x2b   : > { %287 = vmatpush.msra.mxu1 %v227_v31  ;;  %259 = vmatmul.f32.vlgmr.msra.gmra.mxu0 %v203_v32 }
  0x2c   : > { %288 = vmatmul.f32.vlgmr.msra.gmra.mxu1 %v204_v33 }
  0x33   : > { %262 = vmatmul.f32.gmra.mxu0 %v205_v34 }
  0x34   : > { %291 = vmatmul.f32.gmra.mxu1 %v206_v35 }
  0x3b   : > { %265 = vmatmul.f32.gmra.mxu0 %v207_v36 }
  0x3c   : > { %294 = vmatmul.f32.gmra.mxu1 %v208_v37 }
  0x43   : > { %268 = vmatmul.f32.gmra.mxu0 %v209_v38 }
  0x44   : > { %297 = vmatmul.f32.gmra.mxu1 %v210_v39 }
  0x76   : > { %v340_v30 = vpop.permute.xlu2 %339 }
  0x7e   : > { %v345_v38 = vpop.permute.xlu2 %344 }
  0x8b   : > { %v330_v15 = vpop.permute.xlu1 %329 }
  0x8c   : > { %v320_v5 = vpop.permute.xlu0 %319 }
  0x93   : > { %v335_v23 = vpop.permute.xlu1 %334 }
  0x94   : > { %v325_v10 = vpop.permute.xlu0 %324 }
  0x9b   : > { %v355_v33 = vpop.permute.xlu1 %354 }
  0x9c   : > { %v350_v18 = vpop.permute.xlu0 %349 }
  0xa8   : > { %v260_v40 = vpop.f32.mrf.mxu0 }
  0xa9   : > { %v289_v41 = vpop.f32.mrf.mxu1 }
  0xaa   : > { %v290_v56 = vadd.f32 %v289_v41, %v260_v40 }
  0xb0   : > { %v263_v42 = vpop.f32.mrf.mxu0 }
  0xb1   : > { %v292_v43 = vpop.f32.mrf.mxu1 }
  0xb2   : > { %v293_v55 = vadd.f32 %v292_v43, %v263_v42 }
  0xb8   : > { %v266_v45 = vpop.f32.mrf.mxu0 }
  0xb9   : > { %v295_v46 = vpop.f32.mrf.mxu1 }
  0xba   : > { %v296_v54 = vadd.f32 %v295_v46, %v266_v45 }
  0xc0   : > { %v269_v49 = vpop.f32.mrf.mxu0 }
  0xc1   : > { %v298_v50 = vpop.f32.mrf.mxu1 }
  0xc2   : > { %v299_v51 = vadd.f32 %v298_v50, %v269_v49 }
  0xc4   : > { %394 = vmatpush.msra.mxu2 %v299_v51  ;;  %573 = vmatpush.msra.mxu3 %v299_v51 }
  0xc6   : > { %395 = vmatpush.msra.mxu2 %v296_v54  ;;  %574 = vmatpush.msra.mxu3 %v296_v54 }
  0xc8   : > { %396 = vmatpush.msra.mxu2 %v293_v55  ;;  %575 = vmatpush.msra.mxu3 %v293_v55 }
  0xca   : > { %397 = vmatpush.msra.mxu2 %v290_v56  ;;  %576 = vmatpush.msra.mxu3 %v290_v56 }
  0xcb   : > { %561 = vmatmul.msk.f32.vlgmr.msra.gmra.mxu2 %vm357_vm0, %v301_v57  ;;  %567 = vmatmul.msk.f32.vlgmr.msra.gmra.mxu3 %vm357_vm0, %v307_v58 }
  0xd3   : > { %562 = vmatmul.msk.f32.gmra.mxu2 %vm357_vm0, %v302_v61  ;;  %568 = vmatmul.msk.f32.gmra.mxu3 %vm357_vm0, %v308_v62 }
  0xdb   : > { %563 = vmatmul.msk.f32.gmra.mxu2 %vm357_vm0, %v303_v0 }
  0xe3   : > { %564 = vmatmul.msk.f32.gmra.mxu2 %vm357_vm0, %v304_v2 }
  0xeb   : > { %565 = vmatmul.msk.f32.gmra.mxu2 %vm357_vm0, %v305_v3 }
  0xf3   : > { %566 = vmatmul.msk.f32.gmra.mxu2 %vm357_vm0, %v306_v4 }
 0x14e   : > { %v399_v6 = vpop.f32.mrf.mxu2  ;;  %v417_v20 = vpop.f32.mrf.mxu3 }
 0x14f   : > { %v791_v7 = vadd.f32 %v399_v6, %v320_v5  ;;  %v805_v21 = vadd.f32 %v417_v20, %v350_v18 }
 0x151   : > { %v423_v8 = vmul.f32 %v791_v7, %v791_v7  ;;  %v429_v26 = vmul.f32 %v805_v21, %v805_v21 }
 0x153   : > { %v432_v9 = vsel %vm431_vm1, %v423_v8, 0.0  ;;  %v450_v28 = vsel %vm431_vm1, %v429_v26, 0.0 }
 0x154   : > { %433 = vadd.xlane.f32.xlu2 %v432_v9 }
 0x156   : > { %v402_v11 = vpop.f32.mrf.mxu2  ;;  %v420_v34 = vpop.f32.mrf.mxu3 }
 0x157   : > { %v796_v12 = vadd.f32 %v402_v11, %v325_v10  ;;  %v421_v36 = vadd.f32 %v420_v34, %v355_v33 }
 0x159   : > { %v424_v13 = vmul.f32 %v796_v12, %v796_v12  ;;  %v430_v41 = vmul.f32 %v421_v36, %v421_v36 }
 0x15b   : > { %v435_v14 = vsel %vm431_vm1, %v424_v13, 0.0  ;;  %v453_v44 = vsel %vm431_vm1, %v430_v41, 0.0 }
 0x15c   : > { %436 = vadd.xlane.f32.xlu0 %v435_v14 }
 0x15e   : > { %v405_v16 = vpop.f32.mrf.mxu2 }
 0x15f   : > { %v801_v17 = vadd.f32 %v405_v16, %v330_v15 }
 0x161   : > { %v425_v19 = vmul.f32 %v801_v17, %v801_v17 }
 0x163   : > { %v438_v22 = vsel %vm431_vm1, %v425_v19, 0.0 }
 0x164   : > { %439 = vadd.xlane.f32.xlu1 %v438_v22 }
 0x166   : > { %v408_v24 = vpop.f32.mrf.mxu2 }
 0x167   : > { %v808_v25 = vadd.f32 %v408_v24, %v335_v23 }
 0x169   : > { %v426_v27 = vmul.f32 %v808_v25, %v808_v25 }
 0x16b   : > { %v441_v29 = vsel %vm431_vm1, %v426_v27, 0.0 }
 0x16c   : > { %451 = vadd.xlane.f32.xlu1 %v450_v28  ;;  %442 = vadd.xlane.f32.xlu2 %v441_v29 }
 0x16e   : > { %v411_v31 = vpop.f32.mrf.mxu2 }
 0x16f   : > { %v412_v32 = vadd.f32 %v411_v31, %v340_v30 }
 0x171   : > { %v427_v35 = vmul.f32 %v412_v32, %v412_v32 }
 0x173   : > { %v444_v37 = vsel %vm431_vm1, %v427_v35, 0.0 }
 0x174   : > { %445 = vadd.xlane.f32.xlu2 %v444_v37 }
 0x176   : > { %v414_v39 = vpop.f32.mrf.mxu2 }
 0x177   : > { %v415_v40 = vadd.f32 %v414_v39, %v345_v38 }
 0x179   : > { %v428_v42 = vmul.f32 %v415_v40, %v415_v40 }
 0x17b   : > { %v447_v43 = vsel %vm431_vm1, %v428_v42, 0.0 }
 0x17c   : > { %448 = vadd.xlane.f32.xlu0 %v447_v43  ;;  %454 = vadd.xlane.f32.xlu2 %v453_v44 }
 0x1c7   : > { %v434_v45 = vpop.xlane.xlu2 %433 }
 0x1cf   : > { %v437_v47 = vpop.xlane.xlu0 %436 }
 0x1d0   : > { %v456_v49 = vadd.f32 %v437_v47, %v434_v45 }
 0x1d7   : > { %v440_v48 = vpop.xlane.xlu1 %439 }
 0x1d8   : > { %v457_v51 = vadd.f32 %v456_v49, %v440_v48 }
 0x1df   : > { %v443_v46 = vpop.xlane.xlu2 %442  ;;  %v452_v56 = vpop.xlane.xlu1 %451 }
 0x1e0   : > { %v458_v52 = vadd.f32 %v457_v51, %v443_v46 }
 0x1e7   : > { %v446_v50 = vpop.xlane.xlu2 %445 }
 0x1e8   : > { %v459_v53 = vadd.f32 %v458_v52, %v446_v50 }
 0x1ef   : > { %v449_v54 = vpop.xlane.xlu0 %448  ;;  %v455_v58 = vpop.xlane.xlu2 %454 }
 0x1f0   : > { %v460_v55 = vadd.f32 %v459_v53, %v449_v54 }
 0x1f2   : > { %v461_v57 = vadd.f32 %v460_v55, %v452_v56 }
 0x1f4   : > { %v462_v59 = vadd.f32 %v461_v57, %v455_v58 }
 0x1f6   : > { %v463_v60 = vrot.slane %v462_v59, 4 }
 0x1f8   : > { %v464_v61 = vadd.f32 %v463_v60, %v462_v59 }
 0x1fa   : > { %v465_v62 = vrot.slane %v464_v61, 2 }
 0x1fc   : > { %v466_v63 = vadd.f32 %v465_v62, %v464_v61 }
 0x1fe   : > { %v467_v0 = vrot.slane %v466_v63, 1 }
 0x200   : > { %v468_v1 = vadd.f32 %v467_v0, %v466_v63 }
 0x202   : > { %v469_v2 = vmax.f32 %v468_v1, 1e-24 }
 0x204   : > { %589 = vrsqrt.f32 %v469_v2  ;;  %vm476_vm3 = vweird.f32 %v469_v2 }
 0x20a   : > { %v590_v3 = vpop.eup %589 }
 0x20b   : > { %v471_v4 = vmul.f32 %v590_v3, %v469_v2  ;;  %vm477_vm2 = vweird.f32 %v590_v3 }
 0x20c   : > { %vm478_vm4 = vmor %vm476_vm3, %vm477_vm2 }
 0x20d   : > { %v472_v5 = vmul.f32 %v590_v3, %v471_v4 }
 0x20f   : > { %v473_v6 = vmul.f32 0.5, %v472_v5 }
 0x211   : > { %v474_v8 = vsub.f32 1.5, %v473_v6 }
 0x213   : > { %v475_v9 = vmul.f32 %v590_v3, %v474_v8 }
 0x215   : > { %v479_v10 = vsel %vm478_vm4, %v590_v3, %v475_v9 }
 0x216   : > { %v480_v11 = vmul.f32 %v479_v10, %v791_v7  ;;  %v481_v13 = vmul.f32 %v479_v10, %v796_v12  ;;  %v482_v14 = vmul.f32 %v479_v10, %v801_v17  ;;  %v483_v15 = vmul.f32 %v479_v10, %v808_v25 }
 0x217   : > { %v484_v16 = vmul.f32 %v479_v10, %v412_v32  ;;  %v485_v18 = vmul.f32 %v479_v10, %v415_v40  ;;  %v486_v19 = vmul.f32 %v479_v10, %v805_v21  ;;  %v487_v20 = vmul.f32 %v479_v10, %v421_v36 }
 0x218   : > { %488 = vst.msk [vmem:[%s202_s26] sm:$0xff] %vm431_vm1, %v480_v11 }
 0x219   : > { %489 = vst.msk [vmem:[%s202_s26 + $0x8] sm:$0xff] %vm431_vm1, %v481_v13 }
 0x21a   : > { %490 = vst.msk [vmem:[%s202_s26 + $0x10] sm:$0xff] %vm431_vm1, %v482_v14 }
 0x21b   : > { %491 = vst.msk [vmem:[%s202_s26 + $0x18] sm:$0xff] %vm431_vm1, %v483_v15 }
 0x21c   : > { %492 = vst.msk [vmem:[%s202_s26 + $0x20] sm:$0xff] %vm431_vm1, %v484_v16 }
 0x21d   : > { %493 = vst.msk [vmem:[%s202_s26 + $0x28] sm:$0xff] %vm431_vm1, %v485_v18 }
 0x21e   : > { %494 = vst.msk [vmem:[%s202_s26 + $0x30] sm:$0xff] %vm431_vm1, %v486_v19 }
 0x21f   : > { %495 = vst.msk [vmem:[%s202_s26 + $0x38] sm:$0xff] %vm431_vm1, %v487_v20 }
 0x220 PF: > { %s14_s15 = sadd.s32 1, %s597_s15  }
 0x221   : > { %p11_p5 = scmp.ge.s32.totalorder %s14_s15, 4  }
 0x223   :  { %13 = sbr.rel (!%p11_p5) target bundleno = 1 (0x1), region = 66 }

</bundles_post_ra>
